<compile_context>
chip_gen: v5e
topology: v5e:2x2
jax: 0.10.0
libtpu: 0.0.40
codegen_flags: <defaults>
</compile_context>

<pallas_src>
import random
import numpy as np
import jax
import jax.numpy as jnp
from jax import lax
from jax.experimental import pallas as pl
from jax.experimental.pallas import tpu as pltpu


# ---------------- deterministic parameter setup (host-side numpy glue) ----------------
def hz_to_mel(f):
    return 2595.0 * np.log10(1.0 + f / 700.0)


def mel_to_hz(m):
    return 700.0 * (10.0 ** (m / 2595.0) - 1.0)


def mel_frequencies(n_mels, fmin, fmax):
    return mel_to_hz(np.linspace(hz_to_mel(fmin), hz_to_mel(fmax), n_mels))


def lowpass_filter_bank(cutoffs):
    """FIR taps identical to denoiser.dsp.LowPassFilters (hamming-windowed sinc)."""
    width = int(2.0 / min(cutoffs))
    n = 2 * width + 1
    t = np.arange(-width, width + 1, dtype=np.float64)
    # torch.hamming_window(n, periodic=False)
    win = 0.54 - 0.46 * np.cos(2.0 * np.pi * np.arange(n) / (n - 1))
    filts = np.stack([2.0 * c * np.sinc(2.0 * c * t) * win for c in cutoffs])
    return filts.astype(np.float32), width


def _build_banded_taps(w):
    """S[j][r, t] = w[128*j + r - t] (0 outside [0, K)).  Then
    out[:, 128b + t] = sum_j (xwin_block[b+j] @ S[j])[:, t]  reproduces the
    'same' cross-correlation with tap vector w."""
    K = w.shape[0]
    J = (K + 126) // 128 + 1
    r = np.arange(128)[:, None]
    t = np.arange(128)[None, :]
    S = np.zeros((J, 128, 128), np.float32)
    for j in range(J):
        kk = 128 * j + r - t
        valid = (kk >= 0) & (kk < K)
        S[j] = np.where(valid, w[np.clip(kk, 0, K - 1)], 0.0).astype(np.float32)
    return S, J


# ---------------- Pallas kernel ----------------
def _bandmask_kernel(s_ref, xpad_hbm, out_ref, xwin, sem):
    # s_ref:    (J, 128, 128) f32 VMEM  — banded folded taps (identity - midlow + low)
    # xpad_hbm: (Npad, Tp)    f32 HBM   — zero-padded signal rows (pl.ANY, manual DMA)
    # out_ref:  (ROWS, T_TILE) f32 VMEM — current output tile (auto-pipelined)
    # xwin:     (2, ROWS, W)  f32 VMEM  — double-buffered haloed input windows
    # sem:      (2,) DMA semaphores
    ri = pl.program_id(0)
    ti = pl.program_id(1)
    n_tt = pl.num_programs(1)

    ROWS, T_TILE = out_ref.shape
    W = xwin.shape[2]
    J = s_ref.shape[0]
    NB = T_TILE // 128

    def window_copy(t_idx, slot):
        return pltpu.make_async_copy(
            xpad_hbm.at[pl.ds(ri * ROWS, ROWS), pl.ds(t_idx * T_TILE, W)],
            xwin.at[slot],
            sem.at[slot],
        )

    # Prologue of this row-tile's time sweep: fetch window 0 into slot 0.
    @pl.when(ti == 0)
    def _():
        window_copy(0, 0).start()

    slot = lax.rem(ti, 2)
    window_copy(ti, slot).wait()            # current haloed window is ready

    # Prefetch next window of this row-tile while we compute on the current one.
    @pl.when(ti + 1 < n_tt)
    def _():
        window_copy(ti + 1, 1 - slot).start()

    cur = xwin.at[slot]                     # (ROWS, W) view of the live buffer

    # out[:, 128b + t'] = sum_j sum_r xwin[:, 128(b+j)+r] * w[128j + r - t']
    #                   = sum_j xwin_block[b+j] @ S_j      -> pure MXU work.
    for b in range(NB):
        acc = jnp.dot(cur[:, 128 * b:128 * b + 128], s_ref[0],
                      preferred_element_type=jnp.float32)
        for j in range(1, J):
            c0 = 128 * (b + j)
            acc = acc + jnp.dot(cur[:, c0:c0 + 128], s_ref[j],
                                preferred_element_type=jnp.float32)
        out_ref[:, 128 * b:128 * b + 128] = acc    # 128-lane aligned, unmasked vst


# ---------------- wrapper ----------------
def band_mask_pallas(wav, filters, width):
    """wav: (B, C, T) f32; filters: (2, 2*width+1) f32 = [low taps, midlow taps]."""
    B, C, T = wav.shape
    N = B * C
    K = filters.shape[1]
    assert K == 2 * width + 1

    # Fold (wav - midlow + low) into a single FIR pass: w = delta + f_low - f_mid.
    w = filters[0].astype(np.float64) - filters[1].astype(np.float64)
    w[width] += 1.0
    w = w.astype(np.float32)

    S, J = _build_banded_taps(w)           # (J, 128, 128) banded tap matrices
    HALO = 128 * (J - 1)                   # >= K - 1 = 2*width

    T_TILE = min(2048, ((T + 127) // 128) * 128)
    W = T_TILE + HALO                      # haloed window width per tile
    ROWS = min(128, ((N + 7) // 8) * 8)
    n_rt = (N + ROWS - 1) // ROWS
    n_tt = (T + T_TILE - 1) // T_TILE
    Npad = n_rt * ROWS
    Tp = n_tt * T_TILE + HALO              # every window [ti*T_TILE, ti*T_TILE+W) in-bounds

    x = wav.reshape(N, T).astype(jnp.float32)
    # TODO(synk): the leading/trailing zero-pad is still materialized once on the host;
    # in-kernel edge handling would need dynamic-size DMAs.
    xpad = jnp.zeros((Npad, Tp), jnp.float32).at[:N, width:width + T].set(x)

    out = pl.pallas_call(
        _bandmask_kernel,
        out_shape=jax.ShapeDtypeStruct((N, T), jnp.float32),
        grid=(n_rt, n_tt),
        in_specs=[
            pl.BlockSpec((J, 128, 128), lambda ri, ti: (0, 0, 0)),  # taps: DMA'd once
            pl.BlockSpec(memory_space=pl.ANY),                       # signal stays in HBM
        ],
        out_specs=pl.BlockSpec((ROWS, T_TILE), lambda ri, ti: (ri, ti)),
        scratch_shapes=[
            pltpu.VMEM((2, ROWS, W), jnp.float32),
            pltpu.SemaphoreType.DMA((2,)),
        ],
        compiler_params=pltpu.CompilerParams(
            dimension_semantics=("parallel", "arbitrary")),
    )(jnp.asarray(S), xpad)
    return out.reshape(B, C, T)


if __name__ == "__main__":
    # BandMask.__init__ defaults; forward-pass randomness done host-side exactly
    # as in the PyTorch module.
    maxwidth, bands, sample_rate, seed = 0.2, 120, 16000, 42
    rng = random.Random(seed)
    bandwidth = int(abs(maxwidth) * bands)
    mels = mel_frequencies(bands, 40, sample_rate / 2) / sample_rate
    low = rng.randrange(bands)
    high = rng.randrange(low, min(bands, low + bandwidth))
    filters, width = lowpass_filter_bank([mels[low], mels[high]])

    # deterministic small input: (B, C, T)
    B, C, T = 2, 4, 1024
    key = jax.random.PRNGKey(0)
    wav = jax.random.normal(key, (B, C, T), dtype=jnp.float32)

    out = band_mask_pallas(wav, filters, width)
    out = jax.block_until_ready(out)

    # float64 numpy reference of the original (unfused) module math:
    # out = wav - conv(wav, f_mid) + conv(wav, f_low), 'same' cross-correlation.
    wav_np = np.asarray(wav, dtype=np.float64).reshape(B * C, T)
    xp = np.zeros((B * C, T + 2 * width), np.float64)
    xp[:, width:width + T] = wav_np
    f64 = filters.astype(np.float64)
    low_ref = np.zeros_like(wav_np)
    mid_ref = np.zeros_like(wav_np)
    for k in range(2 * width + 1):
        low_ref += f64[0, k] * xp[:, k:k + T]
        mid_ref += f64[1, k] * xp[:, k:k + T]
    ref = (wav_np - mid_ref + low_ref).reshape(B, C, T)

    np.testing.assert_allclose(np.asarray(out), ref, rtol=2e-4, atol=2e-4)
    print("KERNEL_OK")
</pallas_src>

<mosaic_0001>
module attributes {stable_mosaic.version = 11 : i64} {
  func.func @_bandmask_kernel(%arg0: i32, %arg1: i32, %arg2: memref<2x128x128xf32, #tpu.memory_space<vmem>>, %arg3: memref<8x1152xf32, #tpu.memory_space<any>>, %arg4: memref<8x1024xf32, #tpu.memory_space<vmem>>, %arg5: memref<2x8x1152xf32, #tpu.memory_space<vmem>>, %arg6: memref<2x!tpu.dma_semaphore, #tpu.memory_space<semaphore_mem>>) attributes {dimension_semantics = [#tpu.dimension_semantics<parallel>, #tpu.dimension_semantics<arbitrary>], iteration_bounds = array<i64: 1, 1>, scalar_prefetch = 0 : i64, scratch_operands = 2 : i64, tpu.core_type = #tpu.core_type<tc>, window_params = [{pipeline_mode = #tpu.pipeline_mode<synchronous>, transform_indices = @transform_0, window_bounds = array<i64: 2, 128, 128>}, {}, {transform_indices = @transform_2, window_bounds = array<i64: 8, 1024>}]} {
    %c0_i32 = arith.constant 0 : i32
    %0 = arith.cmpi eq, %arg1, %c0_i32 : i32
    %1 = arith.extui %0 : i1 to i32
    %c0_i32_0 = arith.constant 0 : i32
    %2 = arith.cmpi ne, %1, %c0_i32_0 : i32
    scf.if %2 {
      %c8_i32_138 = arith.constant 8 : i32
      %127 = arith.muli %arg0, %c8_i32_138 : i32
      %c0_i32_139 = arith.constant 0 : i32
      %c0_i32_140 = arith.constant 0 : i32
      %c0_i32_141 = arith.constant 0 : i32
      %128 = tpu.memref_slice %arg3[%127, %c0_i32_141] : memref<8x1152xf32, #tpu.memory_space<any>> -> memref<8x1152xf32, #tpu.memory_space<any>>
      %c0_i32_142 = arith.constant 0 : i32
      %c0_i32_143 = arith.constant 0 : i32
      %129 = tpu.memref_slice %arg5[%c0_i32_139, %c0_i32_142, %c0_i32_143] : memref<2x8x1152xf32, #tpu.memory_space<vmem>> -> memref<1x8x1152xf32, #tpu.memory_space<vmem>>
      %130 = tpu.memref_squeeze %129 : memref<1x8x1152xf32, #tpu.memory_space<vmem>> -> memref<8x1152xf32, #tpu.memory_space<vmem>>
      %131 = tpu.memref_slice %arg6[%c0_i32_140] : memref<2x!tpu.dma_semaphore, #tpu.memory_space<semaphore_mem>> -> memref<1x!tpu.dma_semaphore, #tpu.memory_space<semaphore_mem>>
      %132 = tpu.memref_squeeze %131 : memref<1x!tpu.dma_semaphore, #tpu.memory_space<semaphore_mem>> -> memref<!tpu.dma_semaphore, #tpu.memory_space<semaphore_mem>>
      tpu.enqueue_dma source(%128 : memref<8x1152xf32, #tpu.memory_space<any>>) target(%130 : memref<8x1152xf32, #tpu.memory_space<vmem>>) target_semaphore(%132 : memref<!tpu.dma_semaphore, #tpu.memory_space<semaphore_mem>>)
    } else {
    }
    %c2_i32 = arith.constant 2 : i32
    %3 = arith.remsi %arg1, %c2_i32 : i32
    %c8_i32 = arith.constant 8 : i32
    %4 = arith.muli %arg0, %c8_i32 : i32
    %c1024_i32 = arith.constant 1024 : i32
    %5 = arith.muli %arg1, %c1024_i32 : i32
    %6 = tpu.memref_slice %arg3[%4, %5] : memref<8x1152xf32, #tpu.memory_space<any>> -> memref<8x1152xf32, #tpu.memory_space<any>>
    %c0_i32_1 = arith.constant 0 : i32
    %c0_i32_2 = arith.constant 0 : i32
    %7 = tpu.memref_slice %arg5[%3, %c0_i32_1, %c0_i32_2] : memref<2x8x1152xf32, #tpu.memory_space<vmem>> -> memref<1x8x1152xf32, #tpu.memory_space<vmem>>
    %8 = tpu.memref_squeeze %7 : memref<1x8x1152xf32, #tpu.memory_space<vmem>> -> memref<8x1152xf32, #tpu.memory_space<vmem>>
    %9 = tpu.memref_slice %arg6[%3] : memref<2x!tpu.dma_semaphore, #tpu.memory_space<semaphore_mem>> -> memref<1x!tpu.dma_semaphore, #tpu.memory_space<semaphore_mem>>
    %10 = tpu.memref_squeeze %9 : memref<1x!tpu.dma_semaphore, #tpu.memory_space<semaphore_mem>> -> memref<!tpu.dma_semaphore, #tpu.memory_space<semaphore_mem>>
    tpu.wait_dma2 semaphore(%10 : memref<!tpu.dma_semaphore, #tpu.memory_space<semaphore_mem>>) src(%6 : memref<8x1152xf32, #tpu.memory_space<any>>) dst(%8 : memref<8x1152xf32, #tpu.memory_space<vmem>>)
    %c1_i32 = arith.constant 1 : i32
    %11 = arith.addi %arg1, %c1_i32 : i32
    %c1_i32_3 = arith.constant 1 : i32
    %12 = arith.cmpi slt, %11, %c1_i32_3 : i32
    %13 = arith.extui %12 : i1 to i32
    %c0_i32_4 = arith.constant 0 : i32
    %14 = arith.cmpi ne, %13, %c0_i32_4 : i32
    scf.if %14 {
      %c1_i32_138 = arith.constant 1 : i32
      %127 = arith.addi %arg1, %c1_i32_138 : i32
      %c1_i32_139 = arith.constant 1 : i32
      %128 = arith.subi %c1_i32_139, %3 : i32
      %c8_i32_140 = arith.constant 8 : i32
      %129 = arith.muli %arg0, %c8_i32_140 : i32
      %c1024_i32_141 = arith.constant 1024 : i32
      %130 = arith.muli %127, %c1024_i32_141 : i32
      %131 = tpu.memref_slice %arg3[%129, %130] : memref<8x1152xf32, #tpu.memory_space<any>> -> memref<8x1152xf32, #tpu.memory_space<any>>
      %c0_i32_142 = arith.constant 0 : i32
      %c0_i32_143 = arith.constant 0 : i32
      %132 = tpu.memref_slice %arg5[%128, %c0_i32_142, %c0_i32_143] : memref<2x8x1152xf32, #tpu.memory_space<vmem>> -> memref<1x8x1152xf32, #tpu.memory_space<vmem>>
      %133 = tpu.memref_squeeze %132 : memref<1x8x1152xf32, #tpu.memory_space<vmem>> -> memref<8x1152xf32, #tpu.memory_space<vmem>>
      %134 = tpu.memref_slice %arg6[%128] : memref<2x!tpu.dma_semaphore, #tpu.memory_space<semaphore_mem>> -> memref<1x!tpu.dma_semaphore, #tpu.memory_space<semaphore_mem>>
      %135 = tpu.memref_squeeze %134 : memref<1x!tpu.dma_semaphore, #tpu.memory_space<semaphore_mem>> -> memref<!tpu.dma_semaphore, #tpu.memory_space<semaphore_mem>>
      tpu.enqueue_dma source(%131 : memref<8x1152xf32, #tpu.memory_space<any>>) target(%133 : memref<8x1152xf32, #tpu.memory_space<vmem>>) target_semaphore(%135 : memref<!tpu.dma_semaphore, #tpu.memory_space<semaphore_mem>>)
    } else {
    }
    %c0_i32_5 = arith.constant 0 : i32
    %c0_i32_6 = arith.constant 0 : i32
    %15 = tpu.memref_slice %arg5[%3, %c0_i32_5, %c0_i32_6] : memref<2x8x1152xf32, #tpu.memory_space<vmem>> -> memref<1x8x1152xf32, #tpu.memory_space<vmem>>
    %16 = tpu.memref_squeeze %15 : memref<1x8x1152xf32, #tpu.memory_space<vmem>> -> memref<8x1152xf32, #tpu.memory_space<vmem>>
    %c0 = arith.constant 0 : index
    %c0_7 = arith.constant 0 : index
    %17 = vector.load %16[%c0, %c0_7] : memref<8x1152xf32, #tpu.memory_space<vmem>>, vector<8x128xf32>
    %c0_8 = arith.constant 0 : index
    %c0_9 = arith.constant 0 : index
    %c0_10 = arith.constant 0 : index
    %18 = vector.load %arg2[%c0_8, %c0_9, %c0_10] : memref<2x128x128xf32, #tpu.memory_space<vmem>>, vector<1x128x128xf32>
    %19 = vector.shape_cast %18 : vector<1x128x128xf32> to vector<128x128xf32>
    %cst = arith.constant dense<0.000000e+00> : vector<8x128xf32>
    %20 = tpu.matmul %17, %19, %cst {dimension_numbers = #tpu.dot_dimension_numbers<[1], [0], [0], [1], [0, 0, 1, 1], [], []>} : vector<8x128xf32>, vector<128x128xf32>, vector<8x128xf32> -> vector<8x128xf32>
    %c0_i32_11 = arith.constant 0 : i32
    %c0_i32_12 = arith.constant 0 : i32
    %21 = tpu.memref_slice %arg5[%3, %c0_i32_11, %c0_i32_12] : memref<2x8x1152xf32, #tpu.memory_space<vmem>> -> memref<1x8x1152xf32, #tpu.memory_space<vmem>>
    %22 = tpu.memref_squeeze %21 : memref<1x8x1152xf32, #tpu.memory_space<vmem>> -> memref<8x1152xf32, #tpu.memory_space<vmem>>
    %c0_13 = arith.constant 0 : index
    %c128 = arith.constant 128 : index
    %23 = vector.load %22[%c0_13, %c128] : memref<8x1152xf32, #tpu.memory_space<vmem>>, vector<8x128xf32>
    %c1 = arith.constant 1 : index
    %c0_14 = arith.constant 0 : index
    %c0_15 = arith.constant 0 : index
    %24 = vector.load %arg2[%c1, %c0_14, %c0_15] : memref<2x128x128xf32, #tpu.memory_space<vmem>>, vector<1x128x128xf32>
    %25 = vector.shape_cast %24 : vector<1x128x128xf32> to vector<128x128xf32>
    %cst_16 = arith.constant dense<0.000000e+00> : vector<8x128xf32>
    %26 = tpu.matmul %23, %25, %cst_16 {dimension_numbers = #tpu.dot_dimension_numbers<[1], [0], [0], [1], [0, 0, 1, 1], [], []>} : vector<8x128xf32>, vector<128x128xf32>, vector<8x128xf32> -> vector<8x128xf32>
    %27 = arith.addf %20, %26 : vector<8x128xf32>
    %c0_17 = arith.constant 0 : index
    %c0_18 = arith.constant 0 : index
    %28 = vector.load %arg4[%c0_17, %c0_18] : memref<8x1024xf32, #tpu.memory_space<vmem>>, vector<8x128xf32>
    tpu.vector_store %arg4[%c0_17, %c0_18], %27 {strides = array<i32>} : memref<8x1024xf32, #tpu.memory_space<vmem>>, vector<8x128xf32>,
    %c0_i32_19 = arith.constant 0 : i32
    %c0_i32_20 = arith.constant 0 : i32
    %29 = tpu.memref_slice %arg5[%3, %c0_i32_19, %c0_i32_20] : memref<2x8x1152xf32, #tpu.memory_space<vmem>> -> memref<1x8x1152xf32, #tpu.memory_space<vmem>>
    %30 = tpu.memref_squeeze %29 : memref<1x8x1152xf32, #tpu.memory_space<vmem>> -> memref<8x1152xf32, #tpu.memory_space<vmem>>
    %c0_21 = arith.constant 0 : index
    %c128_22 = arith.constant 128 : index
    %31 = vector.load %30[%c0_21, %c128_22] : memref<8x1152xf32, #tpu.memory_space<vmem>>, vector<8x128xf32>
    %c0_23 = arith.constant 0 : index
    %c0_24 = arith.constant 0 : index
    %c0_25 = arith.constant 0 : index
    %32 = vector.load %arg2[%c0_23, %c0_24, %c0_25] : memref<2x128x128xf32, #tpu.memory_space<vmem>>, vector<1x128x128xf32>
    %33 = vector.shape_cast %32 : vector<1x128x128xf32> to vector<128x128xf32>
    %cst_26 = arith.constant dense<0.000000e+00> : vector<8x128xf32>
    %34 = tpu.matmul %31, %33, %cst_26 {dimension_numbers = #tpu.dot_dimension_numbers<[1], [0], [0], [1], [0, 0, 1, 1], [], []>} : vector<8x128xf32>, vector<128x128xf32>, vector<8x128xf32> -> vector<8x128xf32>
    %c0_i32_27 = arith.constant 0 : i32
    %c0_i32_28 = arith.constant 0 : i32
    %35 = tpu.memref_slice %arg5[%3, %c0_i32_27, %c0_i32_28] : memref<2x8x1152xf32, #tpu.memory_space<vmem>> -> memref<1x8x1152xf32, #tpu.memory_space<vmem>>
    %36 = tpu.memref_squeeze %35 : memref<1x8x1152xf32, #tpu.memory_space<vmem>> -> memref<8x1152xf32, #tpu.memory_space<vmem>>
    %c0_29 = arith.constant 0 : index
    %c256 = arith.constant 256 : index
    %37 = vector.load %36[%c0_29, %c256] : memref<8x1152xf32, #tpu.memory_space<vmem>>, vector<8x128xf32>
    %c1_30 = arith.constant 1 : index
    %c0_31 = arith.constant 0 : index
    %c0_32 = arith.constant 0 : index
    %38 = vector.load %arg2[%c1_30, %c0_31, %c0_32] : memref<2x128x128xf32, #tpu.memory_space<vmem>>, vector<1x128x128xf32>
    %39 = vector.shape_cast %38 : vector<1x128x128xf32> to vector<128x128xf32>
    %cst_33 = arith.constant dense<0.000000e+00> : vector<8x128xf32>
    %40 = tpu.matmul %37, %39, %cst_33 {dimension_numbers = #tpu.dot_dimension_numbers<[1], [0], [0], [1], [0, 0, 1, 1], [], []>} : vector<8x128xf32>, vector<128x128xf32>, vector<8x128xf32> -> vector<8x128xf32>
    %41 = arith.addf %34, %40 : vector<8x128xf32>
    %c0_34 = arith.constant 0 : index
    %c128_35 = arith.constant 128 : index
    %42 = vector.load %arg4[%c0_34, %c128_35] : memref<8x1024xf32, #tpu.memory_space<vmem>>, vector<8x128xf32>
    tpu.vector_store %arg4[%c0_34, %c128_35], %41 {strides = array<i32>} : memref<8x1024xf32, #tpu.memory_space<vmem>>, vector<8x128xf32>,
    %c0_i32_36 = arith.constant 0 : i32
    %c0_i32_37 = arith.constant 0 : i32
    %43 = tpu.memref_slice %arg5[%3, %c0_i32_36, %c0_i32_37] : memref<2x8x1152xf32, #tpu.memory_space<vmem>> -> memref<1x8x1152xf32, #tpu.memory_space<vmem>>
    %44 = tpu.memref_squeeze %43 : memref<1x8x1152xf32, #tpu.memory_space<vmem>> -> memref<8x1152xf32, #tpu.memory_space<vmem>>
    %c0_38 = arith.constant 0 : index
    %c256_39 = arith.constant 256 : index
    %45 = vector.load %44[%c0_38, %c256_39] : memref<8x1152xf32, #tpu.memory_space<vmem>>, vector<8x128xf32>
    %c0_40 = arith.constant 0 : index
    %c0_41 = arith.constant 0 : index
    %c0_42 = arith.constant 0 : index
    %46 = vector.load %arg2[%c0_40, %c0_41, %c0_42] : memref<2x128x128xf32, #tpu.memory_space<vmem>>, vector<1x128x128xf32>
    %47 = vector.shape_cast %46 : vector<1x128x128xf32> to vector<128x128xf32>
    %cst_43 = arith.constant dense<0.000000e+00> : vector<8x128xf32>
    %48 = tpu.matmul %45, %47, %cst_43 {dimension_numbers = #tpu.dot_dimension_numbers<[1], [0], [0], [1], [0, 0, 1, 1], [], []>} : vector<8x128xf32>, vector<128x128xf32>, vector<8x128xf32> -> vector<8x128xf32>
    %c0_i32_44 = arith.constant 0 : i32
    %c0_i32_45 = arith.constant 0 : i32
    %49 = tpu.memref_slice %arg5[%3, %c0_i32_44, %c0_i32_45] : memref<2x8x1152xf32, #tpu.memory_space<vmem>> -> memref<1x8x1152xf32, #tpu.memory_space<vmem>>
    %50 = tpu.memref_squeeze %49 : memref<1x8x1152xf32, #tpu.memory_space<vmem>> -> memref<8x1152xf32, #tpu.memory_space<vmem>>
    %c0_46 = arith.constant 0 : index
    %c384 = arith.constant 384 : index
    %51 = vector.load %50[%c0_46, %c384] : memref<8x1152xf32, #tpu.memory_space<vmem>>, vector<8x128xf32>
    %c1_47 = arith.constant 1 : index
    %c0_48 = arith.constant 0 : index
    %c0_49 = arith.constant 0 : index
    %52 = vector.load %arg2[%c1_47, %c0_48, %c0_49] : memref<2x128x128xf32, #tpu.memory_space<vmem>>, vector<1x128x128xf32>
    %53 = vector.shape_cast %52 : vector<1x128x128xf32> to vector<128x128xf32>
    %cst_50 = arith.constant dense<0.000000e+00> : vector<8x128xf32>
    %54 = tpu.matmul %51, %53, %cst_50 {dimension_numbers = #tpu.dot_dimension_numbers<[1], [0], [0], [1], [0, 0, 1, 1], [], []>} : vector<8x128xf32>, vector<128x128xf32>, vector<8x128xf32> -> vector<8x128xf32>
    %55 = arith.addf %48, %54 : vector<8x128xf32>
    %c0_51 = arith.constant 0 : index
    %c256_52 = arith.constant 256 : index
    %56 = vector.load %arg4[%c0_51, %c256_52] : memref<8x1024xf32, #tpu.memory_space<vmem>>, vector<8x128xf32>
    tpu.vector_store %arg4[%c0_51, %c256_52], %55 {strides = array<i32>} : memref<8x1024xf32, #tpu.memory_space<vmem>>, vector<8x128xf32>,
    %c0_i32_53 = arith.constant 0 : i32
    %c0_i32_54 = arith.constant 0 : i32
    %57 = tpu.memref_slice %arg5[%3, %c0_i32_53, %c0_i32_54] : memref<2x8x1152xf32, #tpu.memory_space<vmem>> -> memref<1x8x1152xf32, #tpu.memory_space<vmem>>
    %58 = tpu.memref_squeeze %57 : memref<1x8x1152xf32, #tpu.memory_space<vmem>> -> memref<8x1152xf32, #tpu.memory_space<vmem>>
    %c0_55 = arith.constant 0 : index
    %c384_56 = arith.constant 384 : index
    %59 = vector.load %58[%c0_55, %c384_56] : memref<8x1152xf32, #tpu.memory_space<vmem>>, vector<8x128xf32>
    %c0_57 = arith.constant 0 : index
    %c0_58 = arith.constant 0 : index
    %c0_59 = arith.constant 0 : index
    %60 = vector.load %arg2[%c0_57, %c0_58, %c0_59] : memref<2x128x128xf32, #tpu.memory_space<vmem>>, vector<1x128x128xf32>
    %61 = vector.shape_cast %60 : vector<1x128x128xf32> to vector<128x128xf32>
    %cst_60 = arith.constant dense<0.000000e+00> : vector<8x128xf32>
    %62 = tpu.matmul %59, %61, %cst_60 {dimension_numbers = #tpu.dot_dimension_numbers<[1], [0], [0], [1], [0, 0, 1, 1], [], []>} : vector<8x128xf32>, vector<128x128xf32>, vector<8x128xf32> -> vector<8x128xf32>
    %c0_i32_61 = arith.constant 0 : i32
    %c0_i32_62 = arith.constant 0 : i32
    %63 = tpu.memref_slice %arg5[%3, %c0_i32_61, %c0_i32_62] : memref<2x8x1152xf32, #tpu.memory_space<vmem>> -> memref<1x8x1152xf32, #tpu.memory_space<vmem>>
    %64 = tpu.memref_squeeze %63 : memref<1x8x1152xf32, #tpu.memory_space<vmem>> -> memref<8x1152xf32, #tpu.memory_space<vmem>>
    %c0_63 = arith.constant 0 : index
    %c512 = arith.constant 512 : index
    %65 = vector.load %64[%c0_63, %c512] : memref<8x1152xf32, #tpu.memory_space<vmem>>, vector<8x128xf32>
    %c1_64 = arith.constant 1 : index
    %c0_65 = arith.constant 0 : index
    %c0_66 = arith.constant 0 : index
    %66 = vector.load %arg2[%c1_64, %c0_65, %c0_66] : memref<2x128x128xf32, #tpu.memory_space<vmem>>, vector<1x128x128xf32>
    %67 = vector.shape_cast %66 : vector<1x128x128xf32> to vector<128x128xf32>
    %cst_67 = arith.constant dense<0.000000e+00> : vector<8x128xf32>
    %68 = tpu.matmul %65, %67, %cst_67 {dimension_numbers = #tpu.dot_dimension_numbers<[1], [0], [0], [1], [0, 0, 1, 1], [], []>} : vector<8x128xf32>, vector<128x128xf32>, vector<8x128xf32> -> vector<8x128xf32>
    %69 = arith.addf %62, %68 : vector<8x128xf32>
    %c0_68 = arith.constant 0 : index
    %c384_69 = arith.constant 384 : index
    %70 = vector.load %arg4[%c0_68, %c384_69] : memref<8x1024xf32, #tpu.memory_space<vmem>>, vector<8x128xf32>
    tpu.vector_store %arg4[%c0_68, %c384_69], %69 {strides = array<i32>} : memref<8x1024xf32, #tpu.memory_space<vmem>>, vector<8x128xf32>,
    %c0_i32_70 = arith.constant 0 : i32
    %c0_i32_71 = arith.constant 0 : i32
    %71 = tpu.memref_slice %arg5[%3, %c0_i32_70, %c0_i32_71] : memref<2x8x1152xf32, #tpu.memory_space<vmem>> -> memref<1x8x1152xf32, #tpu.memory_space<vmem>>
    %72 = tpu.memref_squeeze %71 : memref<1x8x1152xf32, #tpu.memory_space<vmem>> -> memref<8x1152xf32, #tpu.memory_space<vmem>>
    %c0_72 = arith.constant 0 : index
    %c512_73 = arith.constant 512 : index
    %73 = vector.load %72[%c0_72, %c512_73] : memref<8x1152xf32, #tpu.memory_space<vmem>>, vector<8x128xf32>
    %c0_74 = arith.constant 0 : index
    %c0_75 = arith.constant 0 : index
    %c0_76 = arith.constant 0 : index
    %74 = vector.load %arg2[%c0_74, %c0_75, %c0_76] : memref<2x128x128xf32, #tpu.memory_space<vmem>>, vector<1x128x128xf32>
    %75 = vector.shape_cast %74 : vector<1x128x128xf32> to vector<128x128xf32>
    %cst_77 = arith.constant dense<0.000000e+00> : vector<8x128xf32>
    %76 = tpu.matmul %73, %75, %cst_77 {dimension_numbers = #tpu.dot_dimension_numbers<[1], [0], [0], [1], [0, 0, 1, 1], [], []>} : vector<8x128xf32>, vector<128x128xf32>, vector<8x128xf32> -> vector<8x128xf32>
    %c0_i32_78 = arith.constant 0 : i32
    %c0_i32_79 = arith.constant 0 : i32
    %77 = tpu.memref_slice %arg5[%3, %c0_i32_78, %c0_i32_79] : memref<2x8x1152xf32, #tpu.memory_space<vmem>> -> memref<1x8x1152xf32, #tpu.memory_space<vmem>>
    %78 = tpu.memref_squeeze %77 : memref<1x8x1152xf32, #tpu.memory_space<vmem>> -> memref<8x1152xf32, #tpu.memory_space<vmem>>
    %c0_80 = arith.constant 0 : index
    %c640 = arith.constant 640 : index
    %79 = vector.load %78[%c0_80, %c640] : memref<8x1152xf32, #tpu.memory_space<vmem>>, vector<8x128xf32>
    %c1_81 = arith.constant 1 : index
    %c0_82 = arith.constant 0 : index
    %c0_83 = arith.constant 0 : index
    %80 = vector.load %arg2[%c1_81, %c0_82, %c0_83] : memref<2x128x128xf32, #tpu.memory_space<vmem>>, vector<1x128x128xf32>
    %81 = vector.shape_cast %80 : vector<1x128x128xf32> to vector<128x128xf32>
    %cst_84 = arith.constant dense<0.000000e+00> : vector<8x128xf32>
    %82 = tpu.matmul %79, %81, %cst_84 {dimension_numbers = #tpu.dot_dimension_numbers<[1], [0], [0], [1], [0, 0, 1, 1], [], []>} : vector<8x128xf32>, vector<128x128xf32>, vector<8x128xf32> -> vector<8x128xf32>
    %83 = arith.addf %76, %82 : vector<8x128xf32>
    %c0_85 = arith.constant 0 : index
    %c512_86 = arith.constant 512 : index
    %84 = vector.load %arg4[%c0_85, %c512_86] : memref<8x1024xf32, #tpu.memory_space<vmem>>, vector<8x128xf32>
    tpu.vector_store %arg4[%c0_85, %c512_86], %83 {strides = array<i32>} : memref<8x1024xf32, #tpu.memory_space<vmem>>, vector<8x128xf32>,
    %c0_i32_87 = arith.constant 0 : i32
    %c0_i32_88 = arith.constant 0 : i32
    %85 = tpu.memref_slice %arg5[%3, %c0_i32_87, %c0_i32_88] : memref<2x8x1152xf32, #tpu.memory_space<vmem>> -> memref<1x8x1152xf32, #tpu.memory_space<vmem>>
    %86 = tpu.memref_squeeze %85 : memref<1x8x1152xf32, #tpu.memory_space<vmem>> -> memref<8x1152xf32, #tpu.memory_space<vmem>>
    %c0_89 = arith.constant 0 : index
    %c640_90 = arith.constant 640 : index
    %87 = vector.load %86[%c0_89, %c640_90] : memref<8x1152xf32, #tpu.memory_space<vmem>>, vector<8x128xf32>
    %c0_91 = arith.constant 0 : index
    %c0_92 = arith.constant 0 : index
    %c0_93 = arith.constant 0 : index
    %88 = vector.load %arg2[%c0_91, %c0_92, %c0_93] : memref<2x128x128xf32, #tpu.memory_space<vmem>>, vector<1x128x128xf32>
    %89 = vector.shape_cast %88 : vector<1x128x128xf32> to vector<128x128xf32>
    %cst_94 = arith.constant dense<0.000000e+00> : vector<8x128xf32>
    %90 = tpu.matmul %87, %89, %cst_94 {dimension_numbers = #tpu.dot_dimension_numbers<[1], [0], [0], [1], [0, 0, 1, 1], [], []>} : vector<8x128xf32>, vector<128x128xf32>, vector<8x128xf32> -> vector<8x128xf32>
    %c0_i32_95 = arith.constant 0 : i32
    %c0_i32_96 = arith.constant 0 : i32
    %91 = tpu.memref_slice %arg5[%3, %c0_i32_95, %c0_i32_96] : memref<2x8x1152xf32, #tpu.memory_space<vmem>> -> memref<1x8x1152xf32, #tpu.memory_space<vmem>>
    %92 = tpu.memref_squeeze %91 : memref<1x8x1152xf32, #tpu.memory_space<vmem>> -> memref<8x1152xf32, #tpu.memory_space<vmem>>
    %c0_97 = arith.constant 0 : index
    %c768 = arith.constant 768 : index
    %93 = vector.load %92[%c0_97, %c768] : memref<8x1152xf32, #tpu.memory_space<vmem>>, vector<8x128xf32>
    %c1_98 = arith.constant 1 : index
    %c0_99 = arith.constant 0 : index
    %c0_100 = arith.constant 0 : index
    %94 = vector.load %arg2[%c1_98, %c0_99, %c0_100] : memref<2x128x128xf32, #tpu.memory_space<vmem>>, vector<1x128x128xf32>
    %95 = vector.shape_cast %94 : vector<1x128x128xf32> to vector<128x128xf32>
    %cst_101 = arith.constant dense<0.000000e+00> : vector<8x128xf32>
    %96 = tpu.matmul %93, %95, %cst_101 {dimension_numbers = #tpu.dot_dimension_numbers<[1], [0], [0], [1], [0, 0, 1, 1], [], []>} : vector<8x128xf32>, vector<128x128xf32>, vector<8x128xf32> -> vector<8x128xf32>
    %97 = arith.addf %90, %96 : vector<8x128xf32>
    %c0_102 = arith.constant 0 : index
    %c640_103 = arith.constant 640 : index
    %98 = vector.load %arg4[%c0_102, %c640_103] : memref<8x1024xf32, #tpu.memory_space<vmem>>, vector<8x128xf32>
    tpu.vector_store %arg4[%c0_102, %c640_103], %97 {strides = array<i32>} : memref<8x1024xf32, #tpu.memory_space<vmem>>, vector<8x128xf32>,
    %c0_i32_104 = arith.constant 0 : i32
    %c0_i32_105 = arith.constant 0 : i32
    %99 = tpu.memref_slice %arg5[%3, %c0_i32_104, %c0_i32_105] : memref<2x8x1152xf32, #tpu.memory_space<vmem>> -> memref<1x8x1152xf32, #tpu.memory_space<vmem>>
    %100 = tpu.memref_squeeze %99 : memref<1x8x1152xf32, #tpu.memory_space<vmem>> -> memref<8x1152xf32, #tpu.memory_space<vmem>>
    %c0_106 = arith.constant 0 : index
    %c768_107 = arith.constant 768 : index
    %101 = vector.load %100[%c0_106, %c768_107] : memref<8x1152xf32, #tpu.memory_space<vmem>>, vector<8x128xf32>
    %c0_108 = arith.constant 0 : index
    %c0_109 = arith.constant 0 : index
    %c0_110 = arith.constant 0 : index
    %102 = vector.load %arg2[%c0_108, %c0_109, %c0_110] : memref<2x128x128xf32, #tpu.memory_space<vmem>>, vector<1x128x128xf32>
    %103 = vector.shape_cast %102 : vector<1x128x128xf32> to vector<128x128xf32>
    %cst_111 = arith.constant dense<0.000000e+00> : vector<8x128xf32>
    %104 = tpu.matmul %101, %103, %cst_111 {dimension_numbers = #tpu.dot_dimension_numbers<[1], [0], [0], [1], [0, 0, 1, 1], [], []>} : vector<8x128xf32>, vector<128x128xf32>, vector<8x128xf32> -> vector<8x128xf32>
    %c0_i32_112 = arith.constant 0 : i32
    %c0_i32_113 = arith.constant 0 : i32
    %105 = tpu.memref_slice %arg5[%3, %c0_i32_112, %c0_i32_113] : memref<2x8x1152xf32, #tpu.memory_space<vmem>> -> memref<1x8x1152xf32, #tpu.memory_space<vmem>>
    %106 = tpu.memref_squeeze %105 : memref<1x8x1152xf32, #tpu.memory_space<vmem>> -> memref<8x1152xf32, #tpu.memory_space<vmem>>
    %c0_114 = arith.constant 0 : index
    %c896 = arith.constant 896 : index
    %107 = vector.load %106[%c0_114, %c896] : memref<8x1152xf32, #tpu.memory_space<vmem>>, vector<8x128xf32>
    %c1_115 = arith.constant 1 : index
    %c0_116 = arith.constant 0 : index
    %c0_117 = arith.constant 0 : index
    %108 = vector.load %arg2[%c1_115, %c0_116, %c0_117] : memref<2x128x128xf32, #tpu.memory_space<vmem>>, vector<1x128x128xf32>
    %109 = vector.shape_cast %108 : vector<1x128x128xf32> to vector<128x128xf32>
    %cst_118 = arith.constant dense<0.000000e+00> : vector<8x128xf32>
    %110 = tpu.matmul %107, %109, %cst_118 {dimension_numbers = #tpu.dot_dimension_numbers<[1], [0], [0], [1], [0, 0, 1, 1], [], []>} : vector<8x128xf32>, vector<128x128xf32>, vector<8x128xf32> -> vector<8x128xf32>
    %111 = arith.addf %104, %110 : vector<8x128xf32>
    %c0_119 = arith.constant 0 : index
    %c768_120 = arith.constant 768 : index
    %112 = vector.load %arg4[%c0_119, %c768_120] : memref<8x1024xf32, #tpu.memory_space<vmem>>, vector<8x128xf32>
    tpu.vector_store %arg4[%c0_119, %c768_120], %111 {strides = array<i32>} : memref<8x1024xf32, #tpu.memory_space<vmem>>, vector<8x128xf32>,
    %c0_i32_121 = arith.constant 0 : i32
    %c0_i32_122 = arith.constant 0 : i32
    %113 = tpu.memref_slice %arg5[%3, %c0_i32_121, %c0_i32_122] : memref<2x8x1152xf32, #tpu.memory_space<vmem>> -> memref<1x8x1152xf32, #tpu.memory_space<vmem>>
    %114 = tpu.memref_squeeze %113 : memref<1x8x1152xf32, #tpu.memory_space<vmem>> -> memref<8x1152xf32, #tpu.memory_space<vmem>>
    %c0_123 = arith.constant 0 : index
    %c896_124 = arith.constant 896 : index
    %115 = vector.load %114[%c0_123, %c896_124] : memref<8x1152xf32, #tpu.memory_space<vmem>>, vector<8x128xf32>
    %c0_125 = arith.constant 0 : index
    %c0_126 = arith.constant 0 : index
    %c0_127 = arith.constant 0 : index
    %116 = vector.load %arg2[%c0_125, %c0_126, %c0_127] : memref<2x128x128xf32, #tpu.memory_space<vmem>>, vector<1x128x128xf32>
    %117 = vector.shape_cast %116 : vector<1x128x128xf32> to vector<128x128xf32>
    %cst_128 = arith.constant dense<0.000000e+00> : vector<8x128xf32>
    %118 = tpu.matmul %115, %117, %cst_128 {dimension_numbers = #tpu.dot_dimension_numbers<[1], [0], [0], [1], [0, 0, 1, 1], [], []>} : vector<8x128xf32>, vector<128x128xf32>, vector<8x128xf32> -> vector<8x128xf32>
    %c0_i32_129 = arith.constant 0 : i32
    %c0_i32_130 = arith.constant 0 : i32
    %119 = tpu.memref_slice %arg5[%3, %c0_i32_129, %c0_i32_130] : memref<2x8x1152xf32, #tpu.memory_space<vmem>> -> memref<1x8x1152xf32, #tpu.memory_space<vmem>>
    %120 = tpu.memref_squeeze %119 : memref<1x8x1152xf32, #tpu.memory_space<vmem>> -> memref<8x1152xf32, #tpu.memory_space<vmem>>
    %c0_131 = arith.constant 0 : index
    %c1024 = arith.constant 1024 : index
    %121 = vector.load %120[%c0_131, %c1024] : memref<8x1152xf32, #tpu.memory_space<vmem>>, vector<8x128xf32>
    %c1_132 = arith.constant 1 : index
    %c0_133 = arith.constant 0 : index
    %c0_134 = arith.constant 0 : index
    %122 = vector.load %arg2[%c1_132, %c0_133, %c0_134] : memref<2x128x128xf32, #tpu.memory_space<vmem>>, vector<1x128x128xf32>
    %123 = vector.shape_cast %122 : vector<1x128x128xf32> to vector<128x128xf32>
    %cst_135 = arith.constant dense<0.000000e+00> : vector<8x128xf32>
    %124 = tpu.matmul %121, %123, %cst_135 {dimension_numbers = #tpu.dot_dimension_numbers<[1], [0], [0], [1], [0, 0, 1, 1], [], []>} : vector<8x128xf32>, vector<128x128xf32>, vector<8x128xf32> -> vector<8x128xf32>
    %125 = arith.addf %118, %124 : vector<8x128xf32>
    %c0_136 = arith.constant 0 : index
    %c896_137 = arith.constant 896 : index
    %126 = vector.load %arg4[%c0_136, %c896_137] : memref<8x1024xf32, #tpu.memory_space<vmem>>, vector<8x128xf32>
    tpu.vector_store %arg4[%c0_136, %c896_137], %125 {strides = array<i32>} : memref<8x1024xf32, #tpu.memory_space<vmem>>, vector<8x128xf32>,
    return
  }
  func.func @transform_0(%arg0: i32, %arg1: i32) -> (i32, i32, i32) {
    %c0_i32 = arith.constant 0 : i32
    %c0_i32_0 = arith.constant 0 : i32
    %c0_i32_1 = arith.constant 0 : i32
    %c0_i32_2 = arith.constant 0 : i32
    return %c0_i32, %c0_i32_0, %c0_i32_1 : i32, i32, i32
  }
  func.func @transform_2(%arg0: i32, %arg1: i32) -> (i32, i32) {
    %c0_i32 = arith.constant 0 : i32
    return %arg0, %arg1 : i32, i32
  }
}

</mosaic_0001>

<bundles_post_ra>
// kernel: tpu_custom_call.1
= control target key start
LH: loop header
LB: loop body
LE: loop exit
PB: predicated region body
PF: predicated region fallthrough
CT: control target
= control target key end

     0   :  { %7 = vsyncpa [#allocation5], 0  ;;  %s1173_s0 = inlined_call_operand.hbm [shape: f32[2,128,128], index: 0, kind: input, shape index: {}]   ;;  %s1174_s1 = inlined_call_operand.hbm [shape: f32[8,1152], index: 1, kind: input, shape index: {}]   ;;  %s1175_s2 = inlined_call_operand.hbm [shape: f32[8,1024], index: 2, kind: output, shape index: {}]  }
   0x1   :  { %8 = vsyncpa [#allocation6], 0  ;;  %s13_s11 = sshll.u32 %s1173_s0, 4  ;;  %s816_s12 = smov [#allocation4]   ;;  %s14_s11 = int_to_ptr.hbm [resolvable:$true] %s13_s11 }
   0x2   :  { %s15_s13 = sshll.u32 %s816_s12, 4  ;;  %s817_s14 = smov 128   ;;  %s16_s13 = int_to_ptr.vmem [resolvable:$true] %s15_s13 }
   0x3   :  { %s818_s15 = smov 8  }
   0x4   :  { %21 = dma.hbm_to_vmem [thread:$0]  %s14_s11, 4096, %s16_s13, [#allocation5], %s817_s14, %s817_s14, %s818_s15  }
   0x5   :  { %810 = dma.done.wait [#allocation5], 4096  }
   0x6   :  { %811 = vsyncadd [#allocation5], 4294963200  ;;  %s43_s18 = sshll.u32 %s1174_s1, 4  ;;  %s819_s19 = smov [#allocation2]   ;;  %s44_s18 = int_to_ptr.hbm [resolvable:$true] %s43_s18 }
   0x7   :  { %s45_s20 = sshll.u32 %s819_s19, 4  ;;  %s46_s20 = int_to_ptr.vmem [resolvable:$true] %s45_s20 }
   0x8   :  { %48 = dma.hbm_to_vmem [thread:$0]  %s44_s18, 1152, %s46_s20, [#allocation3] }
   0x9   :  { %812 = dma.done.wait [#allocation3], 1152 }
   0xa   :  { %813 = vsyncadd [#allocation3], 4294966144  ;;  %v842_v0 = vld [vmem:[#allocation4 + $0xf8] sm:$0xff]  ;;  %v846_v2 = vld [vmem:[#allocation4 + $0xf0] sm:$0xff]  ;;  %s820_s0 = smov [#allocation7]   ;;  %s699_s23 = sshll.u32 %s1175_s2, 4  ;;  %s700_s23 = int_to_ptr.hbm [resolvable:$true] %s699_s23 }
   0xb   :  { %v844_v1 = vld [vmem:[#allocation4 + $0x78] sm:$0xff]  ;;  %201 = vmatpush.msra.mxu2 %v842_v0  ;;  %v850_v3 = vld [vmem:[#allocation4 + $0x70] sm:$0xff]  ;;  %v852_v4 = vld [vmem:[#allocation4 + $0xe8] sm:$0xff]  ;;  %126 = vmatpush.msra.mxu0 %v842_v0  ;;  %s697_s1 = sshll.u32 %s820_s0, 4  ;;  %s698_s1 = int_to_ptr.vmem [resolvable:$true] %s697_s1 }
   0xc   :  { %221 = vmatpush.msra.mxu3 %v844_v1  ;;  %v854_v5 = vld [vmem:[#allocation4 + $0x68] sm:$0xff]  ;;  %146 = vmatpush.msra.mxu1 %v844_v1  ;;  %v860_v6 = vld [vmem:[#allocation4 + $0xe0] sm:$0xff]  ;;  %v868_v8 = vld [vmem:[#allocation4 + $0xd8] sm:$0xff] }
   0xd   :  { %202 = vmatpush.msra.mxu2 %v846_v2  ;;  %v862_v7 = vld [vmem:[#allocation4 + $0x60] sm:$0xff]  ;;  %127 = vmatpush.msra.mxu0 %v846_v2  ;;  %v870_v9 = vld [vmem:[#allocation4 + $0x58] sm:$0xff]  ;;  %v876_v10 = vld [vmem:[#allocation4 + $0xd0] sm:$0xff] }
   0xe   :  { %222 = vmatpush.msra.mxu3 %v850_v3  ;;  %147 = vmatpush.msra.mxu1 %v850_v3  ;;  %v878_v11 = vld [vmem:[#allocation4 + $0x50] sm:$0xff]  ;;  %v884_v12 = vld [vmem:[#allocation4 + $0xc8] sm:$0xff]  ;;  %v892_v14 = vld [vmem:[#allocation4 + $0xc0] sm:$0xff] }
   0xf   :  { %203 = vmatpush.msra.mxu2 %v852_v4  ;;  %128 = vmatpush.msra.mxu0 %v852_v4  ;;  %v886_v13 = vld [vmem:[#allocation4 + $0x48] sm:$0xff]  ;;  %v894_v15 = vld [vmem:[#allocation4 + $0x40] sm:$0xff]  ;;  %v900_v16 = vld [vmem:[#allocation4 + $0xb8] sm:$0xff] }
  0x10   :  { %223 = vmatpush.msra.mxu3 %v854_v5  ;;  %148 = vmatpush.msra.mxu1 %v854_v5  ;;  %v902_v17 = vld [vmem:[#allocation4 + $0x38] sm:$0xff]  ;;  %v908_v18 = vld [vmem:[#allocation4 + $0xb0] sm:$0xff]  ;;  %v916_v20 = vld [vmem:[#allocation4 + $0xa8] sm:$0xff] }
  0x11   :  { %204 = vmatpush.msra.mxu2 %v860_v6  ;;  %129 = vmatpush.msra.mxu0 %v860_v6  ;;  %v910_v19 = vld [vmem:[#allocation4 + $0x30] sm:$0xff]  ;;  %v918_v21 = vld [vmem:[#allocation4 + $0x28] sm:$0xff]  ;;  %v924_v22 = vld [vmem:[#allocation4 + $0xa0] sm:$0xff] }
  0x12   :  { %224 = vmatpush.msra.mxu3 %v862_v7  ;;  %149 = vmatpush.msra.mxu1 %v862_v7  ;;  %v926_v23 = vld [vmem:[#allocation4 + $0x20] sm:$0xff]  ;;  %v932_v24 = vld [vmem:[#allocation4 + $0x98] sm:$0xff]  ;;  %v940_v26 = vld [vmem:[#allocation4 + $0x90] sm:$0xff] }
  0x13   :  { %205 = vmatpush.msra.mxu2 %v868_v8  ;;  %130 = vmatpush.msra.mxu0 %v868_v8  ;;  %v934_v25 = vld [vmem:[#allocation4 + $0x18] sm:$0xff]  ;;  %v942_v27 = vld [vmem:[#allocation4 + $0x10] sm:$0xff]  ;;  %v948_v28 = vld [vmem:[#allocation4 + $0x88] sm:$0xff] }
  0x14   :  { %225 = vmatpush.msra.mxu3 %v870_v9  ;;  %150 = vmatpush.msra.mxu1 %v870_v9  ;;  %v950_v29 = vld [vmem:[#allocation4 + $0x8] sm:$0xff]  ;;  %v956_v30 = vld [vmem:[#allocation4 + $0x80] sm:$0xff]  ;;  %v167_v33 = vld [vmem:[#allocation2 + $0x8] sm:$0xff] }
  0x15   :  { %206 = vmatpush.msra.mxu2 %v876_v10  ;;  %131 = vmatpush.msra.mxu0 %v876_v10  ;;  %v958_v31 = vld [vmem:[#allocation4] sm:$0xff]  ;;  %v91_v34 = vld [vmem:[#allocation2] sm:$0xff]  ;;  %v317_v36 = vld [vmem:[#allocation2 + $0x18] sm:$0xff] }
  0x16   :  { %226 = vmatpush.msra.mxu3 %v878_v11  ;;  %151 = vmatpush.msra.mxu1 %v878_v11  ;;  %v1022_v32 = vld [vmem:[#allocation2 + $0x10] sm:$0xff]  ;;  %v1091_v35 = vld [vmem:[#allocation2 + $0x20] sm:$0xff]  ;;  %v467_v38 = vld [vmem:[#allocation2 + $0x28] sm:$0xff] }
  0x17   :  { %207 = vmatpush.msra.mxu2 %v884_v12  ;;  %132 = vmatpush.msra.mxu0 %v884_v12  ;;  %v484_v37 = vld [vmem:[#allocation2 + $0x30] sm:$0xff]  ;;  %v634_v39 = vld [vmem:[#allocation2 + $0x40] sm:$0xff]  ;;  %v617_v40 = vld [vmem:[#allocation2 + $0x38] sm:$0xff] }
  0x18   :  { %227 = vmatpush.msra.mxu3 %v886_v13  ;;  %152 = vmatpush.msra.mxu1 %v886_v13 }
  0x19   :  { %208 = vmatpush.msra.mxu2 %v892_v14  ;;  %133 = vmatpush.msra.mxu0 %v892_v14 }
  0x1a   :  { %228 = vmatpush.msra.mxu3 %v894_v15  ;;  %153 = vmatpush.msra.mxu1 %v894_v15 }
  0x1b   :  { %209 = vmatpush.msra.mxu2 %v900_v16  ;;  %134 = vmatpush.msra.mxu0 %v900_v16 }
  0x1c   :  { %229 = vmatpush.msra.mxu3 %v902_v17  ;;  %154 = vmatpush.msra.mxu1 %v902_v17 }
  0x1d   :  { %210 = vmatpush.msra.mxu2 %v908_v18  ;;  %135 = vmatpush.msra.mxu0 %v908_v18 }
  0x1e   :  { %230 = vmatpush.msra.mxu3 %v910_v19  ;;  %155 = vmatpush.msra.mxu1 %v910_v19 }
  0x1f   :  { %211 = vmatpush.msra.mxu2 %v916_v20  ;;  %136 = vmatpush.msra.mxu0 %v916_v20 }
  0x20   :  { %231 = vmatpush.msra.mxu3 %v918_v21  ;;  %156 = vmatpush.msra.mxu1 %v918_v21 }
  0x21   :  { %212 = vmatpush.msra.mxu2 %v924_v22  ;;  %137 = vmatpush.msra.mxu0 %v924_v22 }
  0x22   :  { %232 = vmatpush.msra.mxu3 %v926_v23  ;;  %157 = vmatpush.msra.mxu1 %v926_v23 }
  0x23   :  { %213 = vmatpush.msra.mxu2 %v932_v24  ;;  %138 = vmatpush.msra.mxu0 %v932_v24 }
  0x24   :  { %233 = vmatpush.msra.mxu3 %v934_v25  ;;  %158 = vmatpush.msra.mxu1 %v934_v25 }
  0x25   :  { %214 = vmatpush.msra.mxu2 %v940_v26  ;;  %139 = vmatpush.msra.mxu0 %v940_v26 }
  0x26   :  { %234 = vmatpush.msra.mxu3 %v942_v27  ;;  %159 = vmatpush.msra.mxu1 %v942_v27 }
  0x27   :  { %215 = vmatpush.msra.mxu2 %v948_v28  ;;  %140 = vmatpush.msra.mxu0 %v948_v28 }
  0x28   :  { %235 = vmatpush.msra.mxu3 %v950_v29  ;;  %160 = vmatpush.msra.mxu1 %v950_v29 }
  0x29   :  { %216 = vmatpush.msra.mxu2 %v956_v30  ;;  %141 = vmatpush.msra.mxu0 %v956_v30 }
  0x2a   :  { %236 = vmatpush.msra.mxu3 %v958_v31  ;;  %161 = vmatpush.msra.mxu1 %v958_v31 }
  0x2b   :  { %351 = vmatpush.msrb.mxu2 %v842_v0  ;;  %276 = vmatpush.msrb.mxu0 %v842_v0 }
  0x2c   :  { %371 = vmatpush.msrb.mxu3 %v844_v1  ;;  %296 = vmatpush.msrb.mxu1 %v844_v1 }
  0x2d   :  { %352 = vmatpush.msrb.mxu2 %v846_v2  ;;  %277 = vmatpush.msrb.mxu0 %v846_v2 }
  0x2e   :  { %372 = vmatpush.msrb.mxu3 %v850_v3  ;;  %297 = vmatpush.msrb.mxu1 %v850_v3 }
  0x2f   :  { %353 = vmatpush.msrb.mxu2 %v852_v4  ;;  %278 = vmatpush.msrb.mxu0 %v852_v4 }
  0x30   :  { %373 = vmatpush.msrb.mxu3 %v854_v5  ;;  %298 = vmatpush.msrb.mxu1 %v854_v5 }
  0x31   :  { %354 = vmatpush.msrb.mxu2 %v860_v6  ;;  %279 = vmatpush.msrb.mxu0 %v860_v6 }
  0x32   :  { %374 = vmatpush.msrb.mxu3 %v862_v7  ;;  %299 = vmatpush.msrb.mxu1 %v862_v7 }
  0x33   :  { %355 = vmatpush.msrb.mxu2 %v868_v8  ;;  %280 = vmatpush.msrb.mxu0 %v868_v8 }
  0x34   :  { %375 = vmatpush.msrb.mxu3 %v870_v9  ;;  %300 = vmatpush.msrb.mxu1 %v870_v9 }
  0x35   :  { %356 = vmatpush.msrb.mxu2 %v876_v10  ;;  %281 = vmatpush.msrb.mxu0 %v876_v10 }
  0x36   :  { %376 = vmatpush.msrb.mxu3 %v878_v11  ;;  %301 = vmatpush.msrb.mxu1 %v878_v11 }
  0x37   :  { %357 = vmatpush.msrb.mxu2 %v884_v12  ;;  %282 = vmatpush.msrb.mxu0 %v884_v12 }
  0x38   :  { %377 = vmatpush.msrb.mxu3 %v886_v13  ;;  %302 = vmatpush.msrb.mxu1 %v886_v13 }
  0x39   :  { %358 = vmatpush.msrb.mxu2 %v892_v14  ;;  %283 = vmatpush.msrb.mxu0 %v892_v14 }
  0x3a   :  { %378 = vmatpush.msrb.mxu3 %v894_v15  ;;  %303 = vmatpush.msrb.mxu1 %v894_v15 }
  0x3b   :  { %359 = vmatpush.msrb.mxu2 %v900_v16  ;;  %284 = vmatpush.msrb.mxu0 %v900_v16 }
  0x3c   :  { %379 = vmatpush.msrb.mxu3 %v902_v17  ;;  %304 = vmatpush.msrb.mxu1 %v902_v17 }
  0x3d   :  { %360 = vmatpush.msrb.mxu2 %v908_v18  ;;  %285 = vmatpush.msrb.mxu0 %v908_v18 }
  0x3e   :  { %380 = vmatpush.msrb.mxu3 %v910_v19  ;;  %305 = vmatpush.msrb.mxu1 %v910_v19 }
  0x3f   :  { %361 = vmatpush.msrb.mxu2 %v916_v20  ;;  %286 = vmatpush.msrb.mxu0 %v916_v20 }
  0x40   :  { %381 = vmatpush.msrb.mxu3 %v918_v21  ;;  %306 = vmatpush.msrb.mxu1 %v918_v21 }
  0x41   :  { %362 = vmatpush.msrb.mxu2 %v924_v22  ;;  %287 = vmatpush.msrb.mxu0 %v924_v22 }
  0x42   :  { %382 = vmatpush.msrb.mxu3 %v926_v23  ;;  %307 = vmatpush.msrb.mxu1 %v926_v23 }
  0x43   :  { %363 = vmatpush.msrb.mxu2 %v932_v24  ;;  %288 = vmatpush.msrb.mxu0 %v932_v24 }
  0x44   :  { %383 = vmatpush.msrb.mxu3 %v934_v25  ;;  %308 = vmatpush.msrb.mxu1 %v934_v25 }
  0x45   :  { %364 = vmatpush.msrb.mxu2 %v940_v26  ;;  %237 = vmatmul.f32.vlgmr.msra.gmra.mxu3 %v167_v33 }
  0x46   :  { %384 = vmatpush.msrb.mxu3 %v942_v27  ;;  %217 = vmatmul.f32.vlgmr.msra.gmra.mxu2 %v1022_v32 }
  0x47   :  { %365 = vmatpush.msrb.mxu2 %v948_v28  ;;  %289 = vmatpush.msrb.mxu0 %v940_v26 }
  0x48   :  { %385 = vmatpush.msrb.mxu3 %v950_v29  ;;  %309 = vmatpush.msrb.mxu1 %v942_v27 }
  0x49   :  { %366 = vmatpush.msrb.mxu2 %v956_v30  ;;  %290 = vmatpush.msrb.mxu0 %v948_v28 }
  0x4a   :  { %386 = vmatpush.msrb.mxu3 %v958_v31  ;;  %310 = vmatpush.msrb.mxu1 %v950_v29 }
  0x4b   :  { %501 = vmatpush.msra.mxu2 %v842_v0  ;;  %291 = vmatpush.msrb.mxu0 %v956_v30 }
  0x4c   :  { %521 = vmatpush.msra.mxu3 %v844_v1  ;;  %311 = vmatpush.msrb.mxu1 %v958_v31 }
  0x4d   :  { %502 = vmatpush.msra.mxu2 %v846_v2  ;;  %142 = vmatmul.f32.vlgmr.msra.gmra.mxu0 %v167_v33 }
  0x4e   :  { %522 = vmatpush.msra.mxu3 %v850_v3  ;;  %162 = vmatmul.f32.vlgmr.msra.gmra.mxu1 %v91_v34 }
  0x4f   :  { %503 = vmatpush.msra.mxu2 %v852_v4  ;;  %426 = vmatpush.msra.mxu0 %v842_v0 }
  0x50   :  { %523 = vmatpush.msra.mxu3 %v854_v5  ;;  %446 = vmatpush.msra.mxu1 %v844_v1 }
  0x51   :  { %504 = vmatpush.msra.mxu2 %v860_v6  ;;  %427 = vmatpush.msra.mxu0 %v846_v2 }
  0x52   :  { %524 = vmatpush.msra.mxu3 %v862_v7  ;;  %447 = vmatpush.msra.mxu1 %v850_v3 }
  0x53   :  { %505 = vmatpush.msra.mxu2 %v868_v8  ;;  %428 = vmatpush.msra.mxu0 %v852_v4 }
  0x54   :  { %525 = vmatpush.msra.mxu3 %v870_v9  ;;  %448 = vmatpush.msra.mxu1 %v854_v5 }
  0x55   :  { %506 = vmatpush.msra.mxu2 %v876_v10  ;;  %429 = vmatpush.msra.mxu0 %v860_v6 }
  0x56   :  { %526 = vmatpush.msra.mxu3 %v878_v11  ;;  %449 = vmatpush.msra.mxu1 %v862_v7 }
  0x57   :  { %507 = vmatpush.msra.mxu2 %v884_v12  ;;  %430 = vmatpush.msra.mxu0 %v868_v8 }
  0x58   :  { %527 = vmatpush.msra.mxu3 %v886_v13  ;;  %450 = vmatpush.msra.mxu1 %v870_v9 }
  0x59   :  { %508 = vmatpush.msra.mxu2 %v892_v14  ;;  %431 = vmatpush.msra.mxu0 %v876_v10 }
  0x5a   :  { %528 = vmatpush.msra.mxu3 %v894_v15  ;;  %451 = vmatpush.msra.mxu1 %v878_v11 }
  0x5b   :  { %509 = vmatpush.msra.mxu2 %v900_v16  ;;  %432 = vmatpush.msra.mxu0 %v884_v12 }
  0x5c   :  { %529 = vmatpush.msra.mxu3 %v902_v17  ;;  %452 = vmatpush.msra.mxu1 %v886_v13 }
  0x5d   :  { %510 = vmatpush.msra.mxu2 %v908_v18  ;;  %433 = vmatpush.msra.mxu0 %v892_v14 }
  0x5e   :  { %530 = vmatpush.msra.mxu3 %v910_v19  ;;  %453 = vmatpush.msra.mxu1 %v894_v15 }
  0x5f   :  { %511 = vmatpush.msra.mxu2 %v916_v20  ;;  %434 = vmatpush.msra.mxu0 %v900_v16 }
  0x60   :  { %531 = vmatpush.msra.mxu3 %v918_v21  ;;  %454 = vmatpush.msra.mxu1 %v902_v17 }
  0x61   :  { %512 = vmatpush.msra.mxu2 %v924_v22  ;;  %435 = vmatpush.msra.mxu0 %v908_v18 }
  0x62   :  { %532 = vmatpush.msra.mxu3 %v926_v23  ;;  %455 = vmatpush.msra.mxu1 %v910_v19 }
  0x63   :  { %513 = vmatpush.msra.mxu2 %v932_v24  ;;  %436 = vmatpush.msra.mxu0 %v916_v20 }
  0x64   :  { %533 = vmatpush.msra.mxu3 %v934_v25  ;;  %456 = vmatpush.msra.mxu1 %v918_v21 }
  0x65   :  { %514 = vmatpush.msra.mxu2 %v940_v26  ;;  %437 = vmatpush.msra.mxu0 %v924_v22 }
  0x66   :  { %534 = vmatpush.msra.mxu3 %v942_v27  ;;  %457 = vmatpush.msra.mxu1 %v926_v23 }
  0x67   :  { %515 = vmatpush.msra.mxu2 %v948_v28  ;;  %438 = vmatpush.msra.mxu0 %v932_v24 }
  0x68   :  { %535 = vmatpush.msra.mxu3 %v950_v29  ;;  %458 = vmatpush.msra.mxu1 %v934_v25 }
  0x69   :  { %516 = vmatpush.msra.mxu2 %v956_v30  ;;  %387 = vmatmul.f32.vlgmr.msrb.gmra.mxu3 %v317_v36 }
  0x6a   :  { %536 = vmatpush.msra.mxu3 %v958_v31  ;;  %367 = vmatmul.f32.vlgmr.msrb.gmra.mxu2 %v1091_v35 }
  0x6b   :  { %651 = vmatpush.msrb.mxu2 %v842_v0  ;;  %439 = vmatpush.msra.mxu0 %v940_v26 }
  0x6c   :  { %671 = vmatpush.msrb.mxu3 %v844_v1  ;;  %459 = vmatpush.msra.mxu1 %v942_v27 }
  0x6d   :  { %652 = vmatpush.msrb.mxu2 %v846_v2  ;;  %440 = vmatpush.msra.mxu0 %v948_v28 }
  0x6e   :  { %672 = vmatpush.msrb.mxu3 %v850_v3  ;;  %460 = vmatpush.msra.mxu1 %v950_v29 }
  0x6f   :  { %653 = vmatpush.msrb.mxu2 %v852_v4  ;;  %441 = vmatpush.msra.mxu0 %v956_v30 }
  0x70   :  { %673 = vmatpush.msrb.mxu3 %v854_v5  ;;  %461 = vmatpush.msra.mxu1 %v958_v31 }
  0x71   :  { %292 = vmatmul.f32.vlgmr.msrb.gmra.mxu0 %v317_v36  ;;  %312 = vmatmul.f32.vlgmr.msrb.gmra.mxu1 %v1022_v32 }
  0x72   :  { %576 = vmatpush.msrb.mxu0 %v842_v0  ;;  %596 = vmatpush.msrb.mxu1 %v844_v1 }
  0x73   :  { %654 = vmatpush.msrb.mxu2 %v860_v6  ;;  %674 = vmatpush.msrb.mxu3 %v862_v7 }
  0x74   :  { %577 = vmatpush.msrb.mxu0 %v846_v2  ;;  %597 = vmatpush.msrb.mxu1 %v850_v3 }
  0x75   :  { %655 = vmatpush.msrb.mxu2 %v868_v8  ;;  %675 = vmatpush.msrb.mxu3 %v870_v9 }
  0x76   :  { %578 = vmatpush.msrb.mxu0 %v852_v4  ;;  %598 = vmatpush.msrb.mxu1 %v854_v5 }
  0x77   :  { %656 = vmatpush.msrb.mxu2 %v876_v10  ;;  %676 = vmatpush.msrb.mxu3 %v878_v11 }
  0x78   :  { %579 = vmatpush.msrb.mxu0 %v860_v6  ;;  %599 = vmatpush.msrb.mxu1 %v862_v7 }
  0x79   :  { %657 = vmatpush.msrb.mxu2 %v884_v12  ;;  %677 = vmatpush.msrb.mxu3 %v886_v13 }
  0x7a   :  { %580 = vmatpush.msrb.mxu0 %v868_v8  ;;  %600 = vmatpush.msrb.mxu1 %v870_v9 }
  0x7b   :  { %658 = vmatpush.msrb.mxu2 %v892_v14  ;;  %678 = vmatpush.msrb.mxu3 %v894_v15 }
  0x7c   :  { %581 = vmatpush.msrb.mxu0 %v876_v10  ;;  %601 = vmatpush.msrb.mxu1 %v878_v11 }
  0x7d   :  { %659 = vmatpush.msrb.mxu2 %v900_v16  ;;  %679 = vmatpush.msrb.mxu3 %v902_v17 }
  0x7e   :  { %582 = vmatpush.msrb.mxu0 %v884_v12  ;;  %602 = vmatpush.msrb.mxu1 %v886_v13 }
  0x7f   :  { %660 = vmatpush.msrb.mxu2 %v908_v18  ;;  %680 = vmatpush.msrb.mxu3 %v910_v19 }
  0x80   :  { %583 = vmatpush.msrb.mxu0 %v892_v14  ;;  %603 = vmatpush.msrb.mxu1 %v894_v15 }
  0x81   :  { %661 = vmatpush.msrb.mxu2 %v916_v20  ;;  %681 = vmatpush.msrb.mxu3 %v918_v21 }
  0x82   :  { %584 = vmatpush.msrb.mxu0 %v900_v16  ;;  %604 = vmatpush.msrb.mxu1 %v902_v17 }
  0x83   :  { %662 = vmatpush.msrb.mxu2 %v924_v22  ;;  %682 = vmatpush.msrb.mxu3 %v926_v23 }
  0x84   :  { %517 = vmatmul.f32.vlgmr.msra.gmra.mxu2 %v484_v37  ;;  %537 = vmatmul.f32.vlgmr.msra.gmra.mxu3 %v467_v38 }
  0x85   :  { %585 = vmatpush.msrb.mxu0 %v908_v18  ;;  %605 = vmatpush.msrb.mxu1 %v910_v19 }
  0x86   :  { %663 = vmatpush.msrb.mxu2 %v932_v24  ;;  %683 = vmatpush.msrb.mxu3 %v934_v25 }
  0x87   :  { %586 = vmatpush.msrb.mxu0 %v916_v20  ;;  %606 = vmatpush.msrb.mxu1 %v918_v21 }
  0x88   :  { %664 = vmatpush.msrb.mxu2 %v940_v26  ;;  %684 = vmatpush.msrb.mxu3 %v942_v27 }
  0x89   :  { %587 = vmatpush.msrb.mxu0 %v924_v22  ;;  %607 = vmatpush.msrb.mxu1 %v926_v23 }
  0x8a   :  { %665 = vmatpush.msrb.mxu2 %v948_v28  ;;  %685 = vmatpush.msrb.mxu3 %v950_v29 }
  0x8b   :  { %442 = vmatmul.f32.vlgmr.msra.gmra.mxu0 %v467_v38  ;;  %462 = vmatmul.f32.vlgmr.msra.gmra.mxu1 %v1091_v35 }
  0x8c   :  { %588 = vmatpush.msrb.mxu0 %v932_v24  ;;  %608 = vmatpush.msrb.mxu1 %v934_v25 }
  0x8d   :  { %666 = vmatpush.msrb.mxu2 %v956_v30  ;;  %686 = vmatpush.msrb.mxu3 %v958_v31 }
  0x8e   :  { %667 = vmatmul.f32.vlgmr.msrb.gmra.mxu2 %v634_v39  ;;  %687 = vmatmul.f32.vlgmr.msrb.gmra.mxu3 %v617_v40 }
  0x8f   :  { %589 = vmatpush.msrb.mxu0 %v940_v26  ;;  %609 = vmatpush.msrb.mxu1 %v942_v27 }
  0x91   :  { %590 = vmatpush.msrb.mxu0 %v948_v28  ;;  %610 = vmatpush.msrb.mxu1 %v950_v29 }
  0x93   :  { %591 = vmatpush.msrb.mxu0 %v956_v30  ;;  %611 = vmatpush.msrb.mxu1 %v958_v31 }
  0x94   :  { %592 = vmatmul.f32.vlgmr.msrb.gmra.mxu0 %v617_v40  ;;  %612 = vmatmul.f32.vlgmr.msrb.gmra.mxu1 %v484_v37 }
  0xc8   :  { %v238_v42 = vpop.f32.mrf.mxu3 }
  0xc9   :  { %v218_v41 = vpop.f32.mrf.mxu2 }
  0xca   :  { %v239_v43 = vadd.f32 %v238_v42, %v218_v41  ;;  %v143_v44 = vpop.f32.mrf.mxu0 }
  0xcb   :  { %v163_v45 = vpop.f32.mrf.mxu1 }
  0xcc   :  { %v164_v46 = vadd.f32 %v163_v45, %v143_v44  ;;  %241 = vst [vmem:[#allocation7 + $0x8] sm:$0xff] %v239_v43 }
  0xce   :  { %166 = vst [vmem:[#allocation7] sm:$0xff] %v164_v46 }
  0xec   :  { %v388_v48 = vpop.f32.mrf.mxu3 }
  0xed   :  { %v368_v47 = vpop.f32.mrf.mxu2 }
  0xee   :  { %v293_v49 = vpop.f32.mrf.mxu0  ;;  %v313_v50 = vpop.f32.mrf.mxu1  ;;  %v389_v51 = vadd.f32 %v388_v48, %v368_v47 }
  0xef   :  { %v314_v52 = vadd.f32 %v313_v50, %v293_v49 }
  0xf0   :  { %391 = vst [vmem:[#allocation7 + $0x18] sm:$0xff] %v389_v51 }
  0xf1   :  { %316 = vst [vmem:[#allocation7 + $0x10] sm:$0xff] %v314_v52 }
 0x107   :  { %v518_v53 = vpop.f32.mrf.mxu2  ;;  %v538_v54 = vpop.f32.mrf.mxu3 }
 0x108   :  { %v443_v55 = vpop.f32.mrf.mxu0  ;;  %v463_v56 = vpop.f32.mrf.mxu1  ;;  %v539_v57 = vadd.f32 %v538_v54, %v518_v53 }
 0x109   :  { %v464_v58 = vadd.f32 %v463_v56, %v443_v55 }
 0x10a   :  { %541 = vst [vmem:[#allocation7 + $0x28] sm:$0xff] %v539_v57 }
 0x10b   :  { %466 = vst [vmem:[#allocation7 + $0x20] sm:$0xff] %v464_v58 }
 0x111   :  { %v593_v59 = vpop.f32.mrf.mxu0  ;;  %v613_v60 = vpop.f32.mrf.mxu1 }
 0x112   :  { %v614_v61 = vadd.f32 %v613_v60, %v593_v59  ;;  %v668_v62 = vpop.f32.mrf.mxu2  ;;  %v688_v63 = vpop.f32.mrf.mxu3 }
 0x113   :  { %v689_v0 = vadd.f32 %v688_v63, %v668_v62 }
 0x114   :  { %616 = vst [vmem:[#allocation7 + $0x30] sm:$0xff] %v614_v61 }
 0x115   :  { %691 = vst [vmem:[#allocation7 + $0x38] sm:$0xff] %v689_v0 }
 0x116   :  { %702 = dma.vmem_to_hbm [thread:$0]  %s698_s1, 1024, %s700_s23, [#allocation6]  }
 0x117   :  { %814 = dma.done.wait [#allocation6], 1024  }
 0x118   :  { %815 = vsyncadd [#allocation6], 4294966272 }
 0x119   :  { %707 = vsyncpa [#allocation5], 1 }
 0x11a   :  { %708 = vsyncpa [#allocation6], 1 }
 0x11b   :  { %709 = vsyncmov [#allocation3] }
 0x11e   :  { %s710_s24 = vpop.sfrf %709 }
 0x11f   :  { %p731_p0 = scmp.ne.s32.totalorder %s710_s24, 0 }
 0x121   :  { %714 = shalt.err (%p731_p0)  }
 0x122   :  { %716 = vsyncmov [#allocation3 + $0x1] }
 0x125   :  { %s717_s2 = vpop.sfrf %716 }
 0x126   :  { %p732_p1 = scmp.ne.s32.totalorder %s717_s2, 0 }
 0x128   :  { %721 = shalt.err (%p732_p1)  }

</bundles_post_ra>
